<compile_context>
chip_gen: v5e
topology: v5e:2x2
jax: 0.10.0
libtpu: 0.0.40
codegen_flags: <defaults>
</compile_context>

<pallas_src>
import functools
import itertools

import jax
import jax.numpy as jnp
from jax.experimental import pallas as pl
from jax.experimental.pallas import tpu as pltpu


def _fuzzy_inference_kernel(x_ref, o_ref, *, n_terms, n_mf, n_rules):
    """One batch tile: x_ref [TB, n_mf*n_terms], o_ref [TB, R_pad]."""
    r_pad = o_ref.shape[1]

    x = x_ref[...].astype(jnp.float32)  # column m * n_terms + t  ==  x[b, t, m]

    def col(m, t):
        c = m * n_terms + t
        return x[:, c:c + 1]  # [TB, 1]

    # Rule index per output lane; lanes >= n_rules are padding.
    lane = jax.lax.broadcasted_iota(jnp.int32, (1, r_pad), 1)

    # rules[b, r] = prod_m x[b, digit_m(r), m], where digit_m(r) is the m-th
    # base-n_terms digit of r (m = 0 most significant, matching itertools.product).
    acc = None
    rem = lane
    for m in range(n_mf):
        stride = n_terms ** (n_mf - 1 - m)
        # digit = rem // stride via threshold counting (avoids vector integer division).
        digit = jnp.zeros((1, r_pad), jnp.int32)
        for t in range(1, n_terms):
            digit = digit + jnp.where(rem >= t * stride, 1, 0)
        if m + 1 < n_mf:
            rem = rem - digit * stride
        # D_m[b, r] = x[b, digit_m(r), m]  (static select chain, pure VPU).
        d_m = col(m, 0)
        for t in range(1, n_terms):
            d_m = jnp.where(digit == t, col(m, t), d_m)
        acc = d_m if acc is None else acc * d_m

    # Zero the padded rule lanes so they contribute nothing to the L1 norm and the
    # [TB, R_pad] store stays lane-dense with exact zeros in the padding.
    if r_pad != n_rules:
        acc = jnp.where(lane < n_rules, acc, 0.0)

    # L1 normalisation (F.normalize(p=1, dim=1, eps=1e-12)).  Exact reciprocal: one
    # divide per batch row ([TB, 1]) then a broadcast multiply over the rule lanes.
    denom = jnp.maximum(jnp.sum(jnp.abs(acc), axis=1, keepdims=True), 1e-12)
    inv = 1.0 / denom
    o_ref[...] = (acc * inv).astype(o_ref.dtype)


def _round_up(x, m):
    return ((x + m - 1) // m) * m


def _pick_batch_tile(b, r_pad):
    """Batch tile: big enough to amortise per-step overhead, small enough for VMEM."""
    if b <= 128:
        return b
    tb = 512 if b >= 512 else 128
    # Keep the double-buffered input + output tiles well under the default scoped
    # VMEM limit (v7x has only 64 MiB physical / 32 MiB default scoped).
    vmem_budget = 16 * 1024 * 1024
    while tb > 128 and 2 * 4 * tb * (r_pad + 128) > vmem_budget:
        tb //= 2
    return tb


def fuzzy_inference_layer(x, *, n_terms: int, n_membership_functions: int):
    """Pallas implementation of FuzzyInferenceLayer.forward.

    Args:
      x: [batch, n_terms, n_membership_functions] float array (PyTorch layout).
    Returns:
      [batch, n_rules] float32, n_rules = n_terms ** n_membership_functions.
    """
    b, t, m = x.shape
    assert t == n_terms and m == n_membership_functions
    n_rules = n_terms ** n_membership_functions
    r_pad = _round_up(n_rules, 128)              # lane-dense rules axis
    tm = n_terms * n_membership_functions

    # [B, n_mf * n_terms]: batch on sublanes (matches the output tile layout), all
    # memberships packed on one small lane axis.  Column m*n_terms + t == x[b, t, m].
    x2d = jnp.transpose(x, (0, 2, 1)).reshape(b, tm).astype(jnp.float32)

    tb = _pick_batch_tile(b, r_pad)
    b_pad = _round_up(b, tb)
    if b_pad != b:
        # Zero rows -> zero rules -> clamped denom -> zero outputs; sliced off below.
        x2d = jnp.pad(x2d, ((0, b_pad - b), (0, 0)))

    kernel = functools.partial(
        _fuzzy_inference_kernel,
        n_terms=n_terms,
        n_mf=n_membership_functions,
        n_rules=n_rules,
    )

    out = pl.pallas_call(
        kernel,
        out_shape=jax.ShapeDtypeStruct((b_pad, r_pad), jnp.float32),
        grid_spec=pltpu.PrefetchScalarGridSpec(
            num_scalar_prefetch=0,
            grid=(b_pad // tb,),
            in_specs=[pl.BlockSpec((tb, tm), lambda i: (i, 0))],
            out_specs=pl.BlockSpec((tb, r_pad), lambda i: (i, 0)),
        ),
        compiler_params=pltpu.CompilerParams(
            dimension_semantics=("parallel",),
        ),
    )(x2d)

    if b_pad != b:
        out = out[:b]
    if r_pad != n_rules:
        out = out[:, :n_rules]
    return out


def _reference(x, *, n_terms: int, n_membership_functions: int):
    """Pure-JAX reference mirroring the PyTorch forward."""
    comb = jnp.asarray(
        list(itertools.product(range(n_terms), repeat=n_membership_functions)),
        dtype=jnp.int32,
    )  # [R, M]
    gathered = x[:, comb, jnp.arange(n_membership_functions)[None, :]]  # [B, R, M]
    rules = jnp.prod(gathered, axis=2)                                  # [B, R]
    denom = jnp.maximum(jnp.sum(jnp.abs(rules), axis=1, keepdims=True), 1e-12)
    return rules / denom


if __name__ == "__main__":
    n_terms = 3
    n_membership_functions = 4
    batch = 8

    key = jax.random.PRNGKey(0)
    # Typical ANFIS memberships live in (0, 1); uniform keeps this deterministic.
    x = jax.random.uniform(
        key, (batch, n_terms, n_membership_functions), dtype=jnp.float32
    )

    fwd = jax.jit(
        functools.partial(
            fuzzy_inference_layer,
            n_terms=n_terms,
            n_membership_functions=n_membership_functions,
        )
    )
    out = jax.block_until_ready(fwd(x))

    ref = _reference(x, n_terms=n_terms, n_membership_functions=n_membership_functions)
    assert out.shape == (batch, n_terms ** n_membership_functions), out.shape
    assert jnp.allclose(out, ref, atol=1e-5, rtol=1e-5), float(
        jnp.max(jnp.abs(out - ref))
    )
    print("KERNEL_OK")
</pallas_src>

<mosaic_0001>
module attributes {stable_mosaic.version = 11 : i64} {
  func.func @_fuzzy_inference_kernel(%arg0: i32, %arg1: memref<8x12xf32, #tpu.memory_space<vmem>>, %arg2: memref<8x128xf32, #tpu.memory_space<vmem>>) attributes {dimension_semantics = [#tpu.dimension_semantics<parallel>], iteration_bounds = array<i64: 1>, scalar_prefetch = 0 : i64, scratch_operands = 0 : i64, tpu.core_type = #tpu.core_type<tc>, window_params = [{transform_indices = @transform_0, window_bounds = array<i64: 8, 12>}, {transform_indices = @transform_1, window_bounds = array<i64: 8, 128>}]} {
    %c0 = arith.constant 0 : index
    %c0_0 = arith.constant 0 : index
    %0 = vector.load %arg1[%c0, %c0_0] : memref<8x12xf32, #tpu.memory_space<vmem>>, vector<8x12xf32>
    %1 = tpu.iota {dimensions = array<i32: 1>} : vector<1x128xi32>
    %c0_i32 = arith.constant 0 : i32
    %2 = vector.broadcast %c0_i32 : i32 to vector<1x128xi32>
    %c27_i32 = arith.constant 27 : i32
    %3 = vector.broadcast %c27_i32 : i32 to vector<1x128xi32>
    %4 = arith.cmpi sge, %1, %3 : vector<1x128xi32>
    %c1_i32 = arith.constant 1 : i32
    %c0_i32_1 = arith.constant 0 : i32
    %5 = vector.broadcast %c1_i32 : i32 to vector<1x128xi32>
    %6 = vector.broadcast %c0_i32_1 : i32 to vector<1x128xi32>
    %7 = arith.select %4, %5, %6 : vector<1x128xi1>, vector<1x128xi32>
    %8 = arith.addi %2, %7 : vector<1x128xi32>
    %c54_i32 = arith.constant 54 : i32
    %9 = vector.broadcast %c54_i32 : i32 to vector<1x128xi32>
    %10 = arith.cmpi sge, %1, %9 : vector<1x128xi32>
    %c1_i32_2 = arith.constant 1 : i32
    %c0_i32_3 = arith.constant 0 : i32
    %11 = vector.broadcast %c1_i32_2 : i32 to vector<1x128xi32>
    %12 = vector.broadcast %c0_i32_3 : i32 to vector<1x128xi32>
    %13 = arith.select %10, %11, %12 : vector<1x128xi1>, vector<1x128xi32>
    %14 = arith.addi %8, %13 : vector<1x128xi32>
    %c27_i32_4 = arith.constant 27 : i32
    %15 = vector.broadcast %c27_i32_4 : i32 to vector<1x128xi32>
    %16 = arith.muli %14, %15 : vector<1x128xi32>
    %17 = arith.subi %1, %16 : vector<1x128xi32>
    %18 = vector.extract_strided_slice %0 {offsets = [0, 0], sizes = [8, 1], strides = [1, 1]} : vector<8x12xf32> to vector<8x1xf32>
    %c1_i32_5 = arith.constant 1 : i32
    %19 = vector.broadcast %c1_i32_5 : i32 to vector<1x128xi32>
    %20 = arith.cmpi eq, %14, %19 : vector<1x128xi32>
    %21 = vector.extract_strided_slice %0 {offsets = [0, 1], sizes = [8, 1], strides = [1, 1]} : vector<8x12xf32> to vector<8x1xf32>
    %22 = vector.shape_cast %20 : vector<1x128xi1> to vector<1x128xi1>
    %23 = vector.broadcast %22 : vector<1x128xi1> to vector<8x128xi1>
    %24 = vector.shape_cast %21 : vector<8x1xf32> to vector<8x1xf32>
    %25 = vector.broadcast %24 : vector<8x1xf32> to vector<8x128xf32>
    %26 = vector.shape_cast %18 : vector<8x1xf32> to vector<8x1xf32>
    %27 = vector.broadcast %26 : vector<8x1xf32> to vector<8x128xf32>
    %28 = arith.select %23, %25, %27 : vector<8x128xi1>, vector<8x128xf32>
    %c2_i32 = arith.constant 2 : i32
    %29 = vector.broadcast %c2_i32 : i32 to vector<1x128xi32>
    %30 = arith.cmpi eq, %14, %29 : vector<1x128xi32>
    %31 = vector.extract_strided_slice %0 {offsets = [0, 2], sizes = [8, 1], strides = [1, 1]} : vector<8x12xf32> to vector<8x1xf32>
    %32 = vector.shape_cast %30 : vector<1x128xi1> to vector<1x128xi1>
    %33 = vector.broadcast %32 : vector<1x128xi1> to vector<8x128xi1>
    %34 = vector.shape_cast %31 : vector<8x1xf32> to vector<8x1xf32>
    %35 = vector.broadcast %34 : vector<8x1xf32> to vector<8x128xf32>
    %36 = arith.select %33, %35, %28 : vector<8x128xi1>, vector<8x128xf32>
    %c0_i32_6 = arith.constant 0 : i32
    %37 = vector.broadcast %c0_i32_6 : i32 to vector<1x128xi32>
    %c9_i32 = arith.constant 9 : i32
    %38 = vector.broadcast %c9_i32 : i32 to vector<1x128xi32>
    %39 = arith.cmpi sge, %17, %38 : vector<1x128xi32>
    %c1_i32_7 = arith.constant 1 : i32
    %c0_i32_8 = arith.constant 0 : i32
    %40 = vector.broadcast %c1_i32_7 : i32 to vector<1x128xi32>
    %41 = vector.broadcast %c0_i32_8 : i32 to vector<1x128xi32>
    %42 = arith.select %39, %40, %41 : vector<1x128xi1>, vector<1x128xi32>
    %43 = arith.addi %37, %42 : vector<1x128xi32>
    %c18_i32 = arith.constant 18 : i32
    %44 = vector.broadcast %c18_i32 : i32 to vector<1x128xi32>
    %45 = arith.cmpi sge, %17, %44 : vector<1x128xi32>
    %c1_i32_9 = arith.constant 1 : i32
    %c0_i32_10 = arith.constant 0 : i32
    %46 = vector.broadcast %c1_i32_9 : i32 to vector<1x128xi32>
    %47 = vector.broadcast %c0_i32_10 : i32 to vector<1x128xi32>
    %48 = arith.select %45, %46, %47 : vector<1x128xi1>, vector<1x128xi32>
    %49 = arith.addi %43, %48 : vector<1x128xi32>
    %c9_i32_11 = arith.constant 9 : i32
    %50 = vector.broadcast %c9_i32_11 : i32 to vector<1x128xi32>
    %51 = arith.muli %49, %50 : vector<1x128xi32>
    %52 = arith.subi %17, %51 : vector<1x128xi32>
    %53 = vector.extract_strided_slice %0 {offsets = [0, 3], sizes = [8, 1], strides = [1, 1]} : vector<8x12xf32> to vector<8x1xf32>
    %c1_i32_12 = arith.constant 1 : i32
    %54 = vector.broadcast %c1_i32_12 : i32 to vector<1x128xi32>
    %55 = arith.cmpi eq, %49, %54 : vector<1x128xi32>
    %56 = vector.extract_strided_slice %0 {offsets = [0, 4], sizes = [8, 1], strides = [1, 1]} : vector<8x12xf32> to vector<8x1xf32>
    %57 = vector.shape_cast %55 : vector<1x128xi1> to vector<1x128xi1>
    %58 = vector.broadcast %57 : vector<1x128xi1> to vector<8x128xi1>
    %59 = vector.shape_cast %56 : vector<8x1xf32> to vector<8x1xf32>
    %60 = vector.broadcast %59 : vector<8x1xf32> to vector<8x128xf32>
    %61 = vector.shape_cast %53 : vector<8x1xf32> to vector<8x1xf32>
    %62 = vector.broadcast %61 : vector<8x1xf32> to vector<8x128xf32>
    %63 = arith.select %58, %60, %62 : vector<8x128xi1>, vector<8x128xf32>
    %c2_i32_13 = arith.constant 2 : i32
    %64 = vector.broadcast %c2_i32_13 : i32 to vector<1x128xi32>
    %65 = arith.cmpi eq, %49, %64 : vector<1x128xi32>
    %66 = vector.extract_strided_slice %0 {offsets = [0, 5], sizes = [8, 1], strides = [1, 1]} : vector<8x12xf32> to vector<8x1xf32>
    %67 = vector.shape_cast %65 : vector<1x128xi1> to vector<1x128xi1>
    %68 = vector.broadcast %67 : vector<1x128xi1> to vector<8x128xi1>
    %69 = vector.shape_cast %66 : vector<8x1xf32> to vector<8x1xf32>
    %70 = vector.broadcast %69 : vector<8x1xf32> to vector<8x128xf32>
    %71 = arith.select %68, %70, %63 : vector<8x128xi1>, vector<8x128xf32>
    %72 = arith.mulf %36, %71 : vector<8x128xf32>
    %c0_i32_14 = arith.constant 0 : i32
    %73 = vector.broadcast %c0_i32_14 : i32 to vector<1x128xi32>
    %c3_i32 = arith.constant 3 : i32
    %74 = vector.broadcast %c3_i32 : i32 to vector<1x128xi32>
    %75 = arith.cmpi sge, %52, %74 : vector<1x128xi32>
    %c1_i32_15 = arith.constant 1 : i32
    %c0_i32_16 = arith.constant 0 : i32
    %76 = vector.broadcast %c1_i32_15 : i32 to vector<1x128xi32>
    %77 = vector.broadcast %c0_i32_16 : i32 to vector<1x128xi32>
    %78 = arith.select %75, %76, %77 : vector<1x128xi1>, vector<1x128xi32>
    %79 = arith.addi %73, %78 : vector<1x128xi32>
    %c6_i32 = arith.constant 6 : i32
    %80 = vector.broadcast %c6_i32 : i32 to vector<1x128xi32>
    %81 = arith.cmpi sge, %52, %80 : vector<1x128xi32>
    %c1_i32_17 = arith.constant 1 : i32
    %c0_i32_18 = arith.constant 0 : i32
    %82 = vector.broadcast %c1_i32_17 : i32 to vector<1x128xi32>
    %83 = vector.broadcast %c0_i32_18 : i32 to vector<1x128xi32>
    %84 = arith.select %81, %82, %83 : vector<1x128xi1>, vector<1x128xi32>
    %85 = arith.addi %79, %84 : vector<1x128xi32>
    %c3_i32_19 = arith.constant 3 : i32
    %86 = vector.broadcast %c3_i32_19 : i32 to vector<1x128xi32>
    %87 = arith.muli %85, %86 : vector<1x128xi32>
    %88 = arith.subi %52, %87 : vector<1x128xi32>
    %89 = vector.extract_strided_slice %0 {offsets = [0, 6], sizes = [8, 1], strides = [1, 1]} : vector<8x12xf32> to vector<8x1xf32>
    %c1_i32_20 = arith.constant 1 : i32
    %90 = vector.broadcast %c1_i32_20 : i32 to vector<1x128xi32>
    %91 = arith.cmpi eq, %85, %90 : vector<1x128xi32>
    %92 = vector.extract_strided_slice %0 {offsets = [0, 7], sizes = [8, 1], strides = [1, 1]} : vector<8x12xf32> to vector<8x1xf32>
    %93 = vector.shape_cast %91 : vector<1x128xi1> to vector<1x128xi1>
    %94 = vector.broadcast %93 : vector<1x128xi1> to vector<8x128xi1>
    %95 = vector.shape_cast %92 : vector<8x1xf32> to vector<8x1xf32>
    %96 = vector.broadcast %95 : vector<8x1xf32> to vector<8x128xf32>
    %97 = vector.shape_cast %89 : vector<8x1xf32> to vector<8x1xf32>
    %98 = vector.broadcast %97 : vector<8x1xf32> to vector<8x128xf32>
    %99 = arith.select %94, %96, %98 : vector<8x128xi1>, vector<8x128xf32>
    %c2_i32_21 = arith.constant 2 : i32
    %100 = vector.broadcast %c2_i32_21 : i32 to vector<1x128xi32>
    %101 = arith.cmpi eq, %85, %100 : vector<1x128xi32>
    %102 = vector.extract_strided_slice %0 {offsets = [0, 8], sizes = [8, 1], strides = [1, 1]} : vector<8x12xf32> to vector<8x1xf32>
    %103 = vector.shape_cast %101 : vector<1x128xi1> to vector<1x128xi1>
    %104 = vector.broadcast %103 : vector<1x128xi1> to vector<8x128xi1>
    %105 = vector.shape_cast %102 : vector<8x1xf32> to vector<8x1xf32>
    %106 = vector.broadcast %105 : vector<8x1xf32> to vector<8x128xf32>
    %107 = arith.select %104, %106, %99 : vector<8x128xi1>, vector<8x128xf32>
    %108 = arith.mulf %72, %107 : vector<8x128xf32>
    %c0_i32_22 = arith.constant 0 : i32
    %109 = vector.broadcast %c0_i32_22 : i32 to vector<1x128xi32>
    %c1_i32_23 = arith.constant 1 : i32
    %110 = vector.broadcast %c1_i32_23 : i32 to vector<1x128xi32>
    %111 = arith.cmpi sge, %88, %110 : vector<1x128xi32>
    %c1_i32_24 = arith.constant 1 : i32
    %c0_i32_25 = arith.constant 0 : i32
    %112 = vector.broadcast %c1_i32_24 : i32 to vector<1x128xi32>
    %113 = vector.broadcast %c0_i32_25 : i32 to vector<1x128xi32>
    %114 = arith.select %111, %112, %113 : vector<1x128xi1>, vector<1x128xi32>
    %115 = arith.addi %109, %114 : vector<1x128xi32>
    %c2_i32_26 = arith.constant 2 : i32
    %116 = vector.broadcast %c2_i32_26 : i32 to vector<1x128xi32>
    %117 = arith.cmpi sge, %88, %116 : vector<1x128xi32>
    %c1_i32_27 = arith.constant 1 : i32
    %c0_i32_28 = arith.constant 0 : i32
    %118 = vector.broadcast %c1_i32_27 : i32 to vector<1x128xi32>
    %119 = vector.broadcast %c0_i32_28 : i32 to vector<1x128xi32>
    %120 = arith.select %117, %118, %119 : vector<1x128xi1>, vector<1x128xi32>
    %121 = arith.addi %115, %120 : vector<1x128xi32>
    %122 = vector.extract_strided_slice %0 {offsets = [0, 9], sizes = [8, 1], strides = [1, 1]} : vector<8x12xf32> to vector<8x1xf32>
    %c1_i32_29 = arith.constant 1 : i32
    %123 = vector.broadcast %c1_i32_29 : i32 to vector<1x128xi32>
    %124 = arith.cmpi eq, %121, %123 : vector<1x128xi32>
    %125 = vector.extract_strided_slice %0 {offsets = [0, 10], sizes = [8, 1], strides = [1, 1]} : vector<8x12xf32> to vector<8x1xf32>
    %126 = vector.shape_cast %124 : vector<1x128xi1> to vector<1x128xi1>
    %127 = vector.broadcast %126 : vector<1x128xi1> to vector<8x128xi1>
    %128 = vector.shape_cast %125 : vector<8x1xf32> to vector<8x1xf32>
    %129 = vector.broadcast %128 : vector<8x1xf32> to vector<8x128xf32>
    %130 = vector.shape_cast %122 : vector<8x1xf32> to vector<8x1xf32>
    %131 = vector.broadcast %130 : vector<8x1xf32> to vector<8x128xf32>
    %132 = arith.select %127, %129, %131 : vector<8x128xi1>, vector<8x128xf32>
    %c2_i32_30 = arith.constant 2 : i32
    %133 = vector.broadcast %c2_i32_30 : i32 to vector<1x128xi32>
    %134 = arith.cmpi eq, %121, %133 : vector<1x128xi32>
    %135 = vector.extract_strided_slice %0 {offsets = [0, 11], sizes = [8, 1], strides = [1, 1]} : vector<8x12xf32> to vector<8x1xf32>
    %136 = vector.shape_cast %134 : vector<1x128xi1> to vector<1x128xi1>
    %137 = vector.broadcast %136 : vector<1x128xi1> to vector<8x128xi1>
    %138 = vector.shape_cast %135 : vector<8x1xf32> to vector<8x1xf32>
    %139 = vector.broadcast %138 : vector<8x1xf32> to vector<8x128xf32>
    %140 = arith.select %137, %139, %132 : vector<8x128xi1>, vector<8x128xf32>
    %141 = arith.mulf %108, %140 : vector<8x128xf32>
    %c81_i32 = arith.constant 81 : i32
    %142 = vector.broadcast %c81_i32 : i32 to vector<1x128xi32>
    %143 = arith.cmpi slt, %1, %142 : vector<1x128xi32>
    %cst = arith.constant 0.000000e+00 : f32
    %144 = vector.shape_cast %143 : vector<1x128xi1> to vector<1x128xi1>
    %145 = vector.broadcast %144 : vector<1x128xi1> to vector<8x128xi1>
    %146 = vector.broadcast %cst : f32 to vector<8x128xf32>
    %147 = arith.select %145, %141, %146 : vector<8x128xi1>, vector<8x128xf32>
    %148 = math.absf %147 : vector<8x128xf32>
    %cst_31 = arith.constant dense<0.000000e+00> : vector<8xf32>
    %149 = vector.multi_reduction <add>, %148, %cst_31 [1] : vector<8x128xf32> to vector<8xf32>
    %150 = vector.shape_cast %149 : vector<8xf32> to vector<8x1xf32>
    %cst_32 = arith.constant 9.99999996E-13 : f32
    %151 = vector.broadcast %cst_32 : f32 to vector<8x1xf32>
    %152 = arith.maximumf %150, %151 : vector<8x1xf32>
    %cst_33 = arith.constant 1.000000e+00 : f32
    %153 = vector.broadcast %cst_33 : f32 to vector<8x1xf32>
    %154 = arith.divf %153, %152 : vector<8x1xf32>
    %155 = vector.broadcast %154 : vector<8x1xf32> to vector<8x128xf32>
    %156 = arith.mulf %147, %155 : vector<8x128xf32>
    %c0_34 = arith.constant 0 : index
    %c0_35 = arith.constant 0 : index
    %157 = vector.load %arg2[%c0_34, %c0_35] : memref<8x128xf32, #tpu.memory_space<vmem>>, vector<8x128xf32>
    tpu.vector_store %arg2[%c0_34, %c0_35], %156 {strides = array<i32>} : memref<8x128xf32, #tpu.memory_space<vmem>>, vector<8x128xf32>,
    return
  }
  func.func @transform_0(%arg0: i32) -> (i32, i32) {
    %c0_i32 = arith.constant 0 : i32
    %c0_i32_0 = arith.constant 0 : i32
    return %arg0, %c0_i32 : i32, i32
  }
  func.func @transform_1(%arg0: i32) -> (i32, i32) {
    %c0_i32 = arith.constant 0 : i32
    %c0_i32_0 = arith.constant 0 : i32
    return %arg0, %c0_i32 : i32, i32
  }
}

</mosaic_0001>

<bundles_post_ra>
// kernel: fuzzy_inference_layer.1
= control target key start
LH: loop header
LB: loop body
LE: loop exit
PB: predicated region body
PF: predicated region fallthrough
CT: control target
= control target key end

     0   :  { %v217_v1 = vmov 4   ;;  %v218_v2 = vmov 1   ;;  %s246_s0 = inlined_call_operand.vmem [shape: f32[8,12], index: 0, kind: input, shape index: {}]   ;;  %s247_s1 = inlined_call_operand.hbm [shape: f32[8,128], index: 1, kind: output, shape index: {}]  }
   0x1   :  { %v9_v0 = vld [vmem:[%s246_s0] sm:$0xff]  ;;  %178 = vset.pattern.permute.xlu1 %v217_v1  ;;  %176 = vset.pattern.permute.xlu0 %v218_v2 }
   0x2   :  { %6 = vsyncpa [#allocation3], 0  ;;  %51 = vperm.xlu1 %178, %v9_v0   ;;  %24 = vperm.xlu0 %176, %v9_v0   ;;  %v219_v3 = vmov 2   ;;  %v220_v4 = vmov 3   ;;  %v221_v5 = vmov 0   ;;  %v222_v6 = vmov 5  }
   0x3   :  { %180 = vset.pattern.permute.xlu2 %v219_v3  ;;  %v223_v7 = vmov 7   ;;  %v224_v8 = vmov 8   ;;  %v225_v9 = vmov 6   ;;  %v226_v10 = vmov 10   ;;  %s229_s0 = smov [#allocation2]   ;;  %s154_s11 = sshll.u32 %s247_s1, 4  ;;  %s155_s11 = int_to_ptr.hbm [resolvable:$true] %s154_s11 }
   0x4   :  { %36 = vperm.xlu2 %180, %v9_v0   ;;  %v227_v11 = vmov 11   ;;  %v228_v12 = vmov 9   ;;  %v10_v13 = vlaneseq  ;;  %s152_s8 = sshll.u32 %s229_s0, 4  ;;  %s153_s8 = int_to_ptr.vmem [resolvable:$true] %s152_s8 }
   0x6   :  { %v11_v14 = vand.u32 127, %v10_v13 }
   0x8   :  { %vm12_vm0 = vcmp.ge.s32.totalorder %v11_v14, 27  ;;  %vm14_vm1 = vcmp.ge.s32.totalorder %v11_v14, 54 }
   0x9   :  { %v13_v15 = vsel %vm12_vm0, 1, %v221_v5  ;;  %v15_v16 = vsel %vm14_vm1, 1, %v221_v5  ;;  %vm122_vm0 = vcmp.lt.s32.totalorder %v11_v14, 81 }
   0xa   :  { %179 = vset.pattern.permute.xlu1 %v220_v4  ;;  %177 = vset.pattern.permute.xlu0 %v221_v5  ;;  %v16_v17 = vadd.s32 %v15_v16, %v13_v15 }
   0xb   :  { %55 = vperm.xlu1 %179, %v9_v0   ;;  %28 = vperm.xlu0 %177, %v9_v0  }
   0xc   :  { %181 = vset.pattern.permute.xlu2 %v222_v6  ;;  %v17_v18 = vmul.u32 27, %v16_v17  ;;  %vm19_vm9 = vcmp.eq.s32.totalorder %v16_v17, 1  ;;  %vm32_vm11 = vcmp.eq.s32.totalorder %v16_v17, 2 }
   0xd   :  { %63 = vperm.xlu2 %181, %v9_v0  }
   0xe   :  { %v18_v19 = vsub.s32 %v11_v14, %v17_v18 }
  0x10   :  { %vm40_vm2 = vcmp.ge.s32.totalorder %v18_v19, 9  ;;  %vm42_vm3 = vcmp.ge.s32.totalorder %v18_v19, 18 }
  0x11   :  { %v41_v20 = vsel %vm40_vm2, 1, %v221_v5  ;;  %v43_v21 = vsel %vm42_vm3, 1, %v221_v5 }
  0x12   :  { %v44_v22 = vadd.s32 %v43_v21, %v41_v20 }
  0x13   :  { %182 = vset.pattern.permute.xlu1 %v223_v7  ;;  %184 = vset.pattern.permute.xlu0 %v224_v8 }
  0x14   :  { %79 = vperm.xlu1 %182, %v9_v0   ;;  %91 = vperm.xlu0 %184, %v9_v0   ;;  %v45_v23 = vmul.u32 9, %v44_v22  ;;  %vm47_vm8 = vcmp.eq.s32.totalorder %v44_v22, 1  ;;  %vm59_vm12 = vcmp.eq.s32.totalorder %v44_v22, 2 }
  0x15   :  { %183 = vset.pattern.permute.xlu2 %v225_v9 }
  0x16   :  { %83 = vperm.xlu2 %183, %v9_v0   ;;  %v46_v25 = vsub.s32 %v18_v19, %v45_v23 }
  0x18   :  { %vm68_vm4 = vcmp.ge.s32.totalorder %v46_v25, 3  ;;  %vm70_vm5 = vcmp.ge.s32.totalorder %v46_v25, 6 }
  0x19   :  { %v69_v27 = vsel %vm68_vm4, 1, %v221_v5  ;;  %v71_v28 = vsel %vm70_vm5, 1, %v221_v5 }
  0x1a   :  { %v72_v30 = vadd.s32 %v71_v28, %v69_v27 }
  0x1c   :  { %185 = vset.pattern.permute.xlu1 %v226_v10  ;;  %188 = vset.pattern.permute.xlu0 %v227_v11  ;;  %v73_v33 = vmul.u32 3, %v72_v30  ;;  %vm75_vm10 = vcmp.eq.s32.totalorder %v72_v30, 1  ;;  %vm87_vm13 = vcmp.eq.s32.totalorder %v72_v30, 2 }
  0x1d   :  { %105 = vperm.xlu1 %185, %v9_v0  }
  0x1e   :  { %186 = vset.pattern.permute.xlu2 %v228_v12  ;;  %v74_v35 = vsub.s32 %v46_v25, %v73_v33 }
  0x1f   :  { %109 = vperm.xlu2 %186, %v9_v0  }
  0x20   :  { %vm96_vm6 = vcmp.ge.s32.totalorder %v74_v35, 1  ;;  %vm98_vm7 = vcmp.ge.s32.totalorder %v74_v35, 2 }
  0x21   :  { %v97_v38 = vsel %vm96_vm6, 1, %v221_v5  ;;  %v99_v39 = vsel %vm98_vm7, 1, %v221_v5 }
  0x22   :  { %v100_v43 = vadd.s32 %v99_v39, %v97_v38 }
  0x24   :  { %vm101_vm14 = vcmp.eq.s32.totalorder %v100_v43, 1  ;;  %vm113_vm15 = vcmp.eq.s32.totalorder %v100_v43, 2 }
  0x25   :  { %187 = vset.pattern.permute.xlu1 %v227_v11 }
  0x26   :  { %117 = vperm.xlu1 %187, %v9_v0  }
  0x5e   :  { %v37_v26 = vpop.permute.xlu2 %36 }
  0x67   :  { %v64_v32 = vpop.permute.xlu2 %63 }
  0x70   :  { %v84_v37 = vpop.permute.xlu2 %83 }
  0x74   :  { %v52_v24 = vpop.permute.xlu1 %51  ;;  %v25_v31 = vpop.permute.xlu0 %24 }
  0x79   :  { %v110_v49 = vpop.permute.xlu2 %109 }
  0x7d   :  { %v56_v29 = vpop.permute.xlu1 %55  ;;  %v29_v36 = vpop.permute.xlu0 %28 }
  0x7e   :  { %v58_v41 = vsel %vm47_vm8, %v52_v24, %v56_v29  ;;  %v31_v42 = vsel %vm19_vm9, %v25_v31, %v29_v36 }
  0x7f   :  { %v39_v46 = vsel %vm32_vm11, %v37_v26, %v31_v42  ;;  %v66_v47 = vsel %vm59_vm12, %v64_v32, %v58_v41 }
  0x80   :  { %v67_v50 = vmul.f32 %v66_v47, %v39_v46 }
  0x86   :  { %v80_v34 = vpop.permute.xlu1 %79  ;;  %v92_v45 = vpop.permute.xlu0 %91 }
  0x87   :  { %v86_v44 = vsel %vm75_vm10, %v80_v34, %v84_v37 }
  0x88   :  { %v94_v48 = vsel %vm87_vm13, %v92_v45, %v86_v44 }
  0x89   :  { %v95_v51 = vmul.f32 %v94_v48, %v67_v50 }
  0x8f   :  { %v106_v40 = vpop.permute.xlu1 %105 }
  0x90   :  { %v112_v52 = vsel %vm101_vm14, %v106_v40, %v110_v49 }
  0x98   :  { %v118_v53 = vpop.permute.xlu1 %117 }
  0x99   :  { %v120_v54 = vsel %vm113_vm15, %v118_v53, %v112_v52 }
  0x9a   :  { %v121_v55 = vmul.f32 %v120_v54, %v95_v51 }
  0x9c   :  { %v125_v56 = vsel %vm122_vm0, %v121_v55, 0.0 }
  0x9d   :  { %v126_v57 = vand.u32 2147483647, %v125_v56 }
  0x9f   :  { %127 = vadd.xlane.f32.xlu2 %v126_v57 }
 0x112   :  { %v128_v58 = vpop.xlane.xlu2 %127 }
 0x113   :  { %v129_v59 = vmax.f32 %v128_v58, 1e-12 }
 0x115   :  { %189 = vrcp.f32 %v129_v59  ;;  %v141_v63 = vand.u32 2147483648, %v129_v59  ;;  %v139_v1 = vand.u32 2147483647, %v129_v59  ;;  %vm135_vm2 = vweird.f32 %v129_v59 }
 0x117   :  { %v142_v3 = vor.u32 1.1754944e-38, %v141_v63  ;;  %vm140_vm4 = vcmp.eq.f32.partialorder %v139_v1, 8.507059e+37 }
 0x11b   :  { %v190_v60 = vpop.eup %189 }
 0x11c   :  { %v131_v61 = vmul.f32 %v190_v60, %v129_v59  ;;  %vm136_vm1 = vweird.f32 %v190_v60 }
 0x11d   :  { %vm137_vm3 = vmor %vm135_vm2, %vm136_vm1 }
 0x11e   :  { %v132_v62 = vsub.f32 1.0, %v131_v61 }
 0x120   :  { %v133_v0 = vmul.f32 %v190_v60, %v132_v62 }
 0x122   :  { %v134_v2 = vadd.f32 %v190_v60, %v133_v0 }
 0x124   :  { %v138_v4 = vsel %vm137_vm3, %v190_v60, %v134_v2 }
 0x125   :  { %v143_v5 = vsel %vm140_vm4, %v142_v3, %v138_v4 }
 0x126   :  { %v145_v6 = vmul.f32 %v143_v5, %v125_v56 }
 0x128   :  { %146 = vst [vmem:[#allocation2] sm:$0xff] %v145_v6 }
 0x129   :  { %157 = dma.vmem_to_hbm [thread:$0]  %s153_s8, 128, %s155_s11, [#allocation3]  }
 0x12a   :  { %215 = dma.done.wait [#allocation3], 128  }
 0x12b   :  { %216 = vsyncadd [#allocation3], 4294967168 }
 0x12c   :  { %162 = vsyncpa [#allocation3], 1 }

</bundles_post_ra>
